<compile_context>
chip_gen: v6e
topology: v6e:2x2x1
jax: 0.10.0
libtpu: 0.0.40
codegen_flags: <defaults>
</compile_context>

<pallas_src>
import jax
import jax.numpy as jnp
from jax.experimental import pallas as pl
from jax.experimental.pallas import tpu as pltpu


_EPS = 1e-8                      # torch F.cosine_similarity default eps
_LANE = 128
_TARGET_BLOCK_BYTES = 4 << 20    # ~4 MiB per input block per grid step


def _cosine_sim_kernel(x_ref, p_ref, o_ref):
    # x_ref / p_ref: (TB, C, TILE_HW) VMEM tiles; o_ref: (TB, 1, TILE_HW)
    x = x_ref[...].astype(jnp.float32)
    p = p_ref[...].astype(jnp.float32)

    dot = jnp.sum(x * p, axis=1, keepdims=True)   # (TB, 1, TILE_HW)
    sx = jnp.sum(x * x, axis=1, keepdims=True)    # ||x||^2
    sp = jnp.sum(p * p, axis=1, keepdims=True)    # ||p||^2

    # dot / max(||x|| * ||p||, eps)
    inv = jax.lax.rsqrt(jnp.maximum(sx * sp, _EPS * _EPS))
    o_ref[...] = (dot * inv).astype(o_ref.dtype)


def _choose_tiles(n, c, hw, itemsize):
    """Pick (batch_tile, hw_tile) targeting ~4 MiB per input block.

    Prefers hw_tile == full HW (fully contiguous per-image DMA run) and grows
    the batch tile to fill the budget; falls back to tiling HW for big images.
    Also guarantees >= 2 parallel grid steps when possible (v7x megacore).
    """
    lane_cols = pl.cdiv(hw, _LANE) * _LANE
    per_image_bytes = c * lane_cols * itemsize

    if per_image_bytes > _TARGET_BLOCK_BYTES and lane_cols > _LANE:
        # One image per block; tile the HW axis in 128-lane multiples.
        cols_budget = max(
            _LANE, (_TARGET_BLOCK_BYTES // (c * itemsize) // _LANE) * _LANE)
        tile_hw = int(min(lane_cols, cols_budget))
        tb = 1
    else:
        # Whole image per block; grow the batch tile to fill the budget.
        tile_hw = int(lane_cols)
        tb = int(max(1, min(n, _TARGET_BLOCK_BYTES // max(per_image_bytes, 1))))

    # Megacore: ensure the parallel grid has >= 2 iterations (v7x has 2 TCs).
    if pl.cdiv(n, tb) * pl.cdiv(hw, tile_hw) < 2:
        if n >= 2:
            tb = pl.cdiv(n, 2)
        elif tile_hw >= 2 * _LANE:
            tile_hw = pl.cdiv(tile_hw // _LANE, 2) * _LANE

    # If a single block covers the whole HW axis, use the exact extent
    # (full-dim exception) so the block never exceeds the array dim.
    if tile_hw >= hw:
        tile_hw = hw
    return int(tb), int(tile_hw)


def learn_similarity(x, pca):
    """Cosine similarity along channel dim (dim=1); output shape (N, 1, H, W)."""
    assert x.shape == pca.shape, "input and pca must have the same shape"
    N, C, H, W = x.shape
    HW = H * W

    x_f = x.reshape(N, C, HW)
    p_f = pca.reshape(N, C, HW)

    itemsize = jnp.dtype(x.dtype).itemsize
    tb, tile_hw = _choose_tiles(N, C, HW, itemsize)
    grid = (pl.cdiv(N, tb), pl.cdiv(HW, tile_hw))

    # Right-size the VMEM request: 2 inputs x 2 buffers + 2 output buffers
    # + margin; never below the 32 MiB default, never above 48 MiB (v7x has
    # only 64 MiB physical VMEM per TensorCore).
    in_block_bytes = tb * C * tile_hw * itemsize
    out_block_bytes = tb * 1 * tile_hw * itemsize
    vmem_need = 2 * 2 * in_block_bytes + 2 * out_block_bytes + (4 << 20)
    vmem_limit = int(min(48 << 20, max(32 << 20, vmem_need)))

    out = pl.pallas_call(
        _cosine_sim_kernel,
        out_shape=jax.ShapeDtypeStruct((N, 1, HW), x.dtype),
        grid_spec=pltpu.PrefetchScalarGridSpec(
            num_scalar_prefetch=0,
            grid=grid,
            in_specs=[
                pl.BlockSpec((tb, C, tile_hw), lambda i, j: (i, 0, j)),
                pl.BlockSpec((tb, C, tile_hw), lambda i, j: (i, 0, j)),
            ],
            out_specs=pl.BlockSpec((tb, 1, tile_hw), lambda i, j: (i, 0, j)),
        ),
        compiler_params=pltpu.CompilerParams(
            dimension_semantics=("parallel", "parallel"),
            vmem_limit_bytes=vmem_limit,
        ),
    )(x_f, p_f)

    return out.reshape(N, 1, H, W)


def _reference(x, pca):
    # Matches torch F.cosine_similarity: dot / max(||x|| * ||p||, eps)
    x32 = x.astype(jnp.float32)
    p32 = pca.astype(jnp.float32)
    dot = jnp.sum(x32 * p32, axis=1)
    sx = jnp.sum(x32 * x32, axis=1)
    sp = jnp.sum(p32 * p32, axis=1)
    sim = dot / jnp.sqrt(jnp.maximum(sx * sp, _EPS * _EPS))
    return sim[:, None, :, :].astype(x.dtype)


if __name__ == "__main__":
    key = jax.random.PRNGKey(0)
    k1, k2, k3, k4 = jax.random.split(key, 4)

    # Primary small test (module-consistent shapes).
    N, C, H, W = 2, 4, 16, 16
    x = jax.random.normal(k1, (N, C, H, W), dtype=jnp.float32)
    pca = jax.random.normal(k2, (N, C, H, W), dtype=jnp.float32)

    sim = jax.block_until_ready(learn_similarity(x, pca))
    ref = _reference(x, pca)
    assert sim.shape == (N, 1, H, W), sim.shape
    assert jnp.allclose(sim, ref, atol=1e-5, rtol=1e-5), "mismatch vs reference"

    # Secondary test: H*W not a multiple of 128 (exercises the ragged last
    # block / full-dim-exception path, with no jnp.pad anywhere).
    N2, C2, H2, W2 = 3, 4, 10, 10
    x2 = jax.random.normal(k3, (N2, C2, H2, W2), dtype=jnp.float32)
    p2 = jax.random.normal(k4, (N2, C2, H2, W2), dtype=jnp.float32)
    sim2 = jax.block_until_ready(learn_similarity(x2, p2))
    ref2 = _reference(x2, p2)
    assert sim2.shape == (N2, 1, H2, W2), sim2.shape
    assert jnp.allclose(sim2, ref2, atol=1e-5, rtol=1e-5), "mismatch vs reference (ragged)"

    print("KERNEL_OK")
</pallas_src>

<mosaic_0001>
module attributes {stable_mosaic.version = 11 : i64} {
  func.func @_cosine_sim_kernel(%arg0: i32, %arg1: i32, %arg2: memref<1x4x256xf32, #tpu.memory_space<vmem>>, %arg3: memref<1x4x256xf32, #tpu.memory_space<vmem>>, %arg4: memref<1x1x256xf32, #tpu.memory_space<vmem>>) attributes {dimension_semantics = [#tpu.dimension_semantics<parallel>, #tpu.dimension_semantics<parallel>], iteration_bounds = array<i64: 2, 1>, scalar_prefetch = 0 : i64, scratch_operands = 0 : i64, tpu.core_type = #tpu.core_type<tc>, window_params = [{transform_indices = @transform_0, window_bounds = array<i64: 1, 4, 256>}, {transform_indices = @transform_1, window_bounds = array<i64: 1, 4, 256>}, {transform_indices = @transform_2, window_bounds = array<i64: 1, 1, 256>}]} {
    %c0 = arith.constant 0 : index
    %c0_0 = arith.constant 0 : index
    %c0_1 = arith.constant 0 : index
    %0 = vector.load %arg2[%c0, %c0_0, %c0_1] : memref<1x4x256xf32, #tpu.memory_space<vmem>>, vector<1x4x256xf32>
    %c0_2 = arith.constant 0 : index
    %c0_3 = arith.constant 0 : index
    %c0_4 = arith.constant 0 : index
    %1 = vector.load %arg3[%c0_2, %c0_3, %c0_4] : memref<1x4x256xf32, #tpu.memory_space<vmem>>, vector<1x4x256xf32>
    %2 = arith.mulf %0, %1 : vector<1x4x256xf32>
    %cst = arith.constant dense<0.000000e+00> : vector<1x256xf32>
    %3 = vector.multi_reduction <add>, %2, %cst [1] : vector<1x4x256xf32> to vector<1x256xf32>
    %4 = vector.shape_cast %3 : vector<1x256xf32> to vector<1x1x256xf32>
    %5 = arith.mulf %0, %0 : vector<1x4x256xf32>
    %cst_5 = arith.constant dense<0.000000e+00> : vector<1x256xf32>
    %6 = vector.multi_reduction <add>, %5, %cst_5 [1] : vector<1x4x256xf32> to vector<1x256xf32>
    %7 = vector.shape_cast %6 : vector<1x256xf32> to vector<1x1x256xf32>
    %8 = arith.mulf %1, %1 : vector<1x4x256xf32>
    %cst_6 = arith.constant dense<0.000000e+00> : vector<1x256xf32>
    %9 = vector.multi_reduction <add>, %8, %cst_6 [1] : vector<1x4x256xf32> to vector<1x256xf32>
    %10 = vector.shape_cast %9 : vector<1x256xf32> to vector<1x1x256xf32>
    %11 = arith.mulf %7, %10 : vector<1x1x256xf32>
    %cst_7 = arith.constant 1.000000e-16 : f32
    %12 = vector.broadcast %cst_7 : f32 to vector<1x1x256xf32>
    %13 = arith.maximumf %11, %12 : vector<1x1x256xf32>
    %14 = math.rsqrt %13 : vector<1x1x256xf32>
    %15 = arith.mulf %4, %14 : vector<1x1x256xf32>
    %c0_8 = arith.constant 0 : index
    %c0_9 = arith.constant 0 : index
    %c0_10 = arith.constant 0 : index
    %16 = vector.load %arg4[%c0_8, %c0_9, %c0_10] : memref<1x1x256xf32, #tpu.memory_space<vmem>>, vector<1x1x256xf32>
    tpu.vector_store %arg4[%c0_8, %c0_9, %c0_10], %15 {strides = array<i32>} : memref<1x1x256xf32, #tpu.memory_space<vmem>>, vector<1x1x256xf32>,
    return
  }
  func.func @transform_0(%arg0: i32, %arg1: i32) -> (i32, i32, i32) {
    %c0_i32 = arith.constant 0 : i32
    %c0_i32_0 = arith.constant 0 : i32
    return %arg0, %c0_i32, %arg1 : i32, i32, i32
  }
  func.func @transform_1(%arg0: i32, %arg1: i32) -> (i32, i32, i32) {
    %c0_i32 = arith.constant 0 : i32
    %c0_i32_0 = arith.constant 0 : i32
    return %arg0, %c0_i32, %arg1 : i32, i32, i32
  }
  func.func @transform_2(%arg0: i32, %arg1: i32) -> (i32, i32, i32) {
    %c0_i32 = arith.constant 0 : i32
    %c0_i32_0 = arith.constant 0 : i32
    return %arg0, %c0_i32, %arg1 : i32, i32, i32
  }
}

</mosaic_0001>

<bundles_post_ra>
// kernel: tpu_custom_call.1
= control target key start
LH: loop header
LB: loop body
LE: loop exit
PB: predicated region body
PF: predicated region fallthrough
CT: control target
= control target key end

     0   :  { %7 = vsyncpa [#allocation3], 0  ;;  %s861_s0 = inlined_call_operand.hbm [shape: f32[2,4,256], index: 0, kind: input, shape index: {}]   ;;  %s862_s1 = inlined_call_operand.hbm [shape: f32[2,4,256], index: 1, kind: input, shape index: {}]   ;;  %s863_s2 = inlined_call_operand.hbm [shape: f32[2,1,256], index: 2, kind: output, shape index: {}]  }
   0x1   :  { %9 = vsyncpa [#allocation3 + $0x1], 0 }
   0x2   :  { %10 = vsyncpa [#allocation6], 0 }
   0x3   :  { %12 = vsyncpa [#allocation6 + $0x1], 0 }
   0x4   :  { %13 = vsyncpa [#allocation4], 0 }
   0x5   :  { %15 = vsyncpa [#allocation4 + $0x1], 0  ;;  %s693_s9 = smov 0   ;;  %s695_s10 = smov 0  }
   0x6   :  { %s697_s11 = smov 0   ;;  %s699_s12 = smov 0  }
   0x7   :  { %s701_s13 = smov 0   ;;  %s703_s14 = smov 0  }
   0x8 LB: > { %s438_s15 = sadd.s32 4294967295, %s672_s14   ;;  %s439_s16 = sadd.s32 4294967294, %s672_s14   ;;  %s672_s14 = sphi %s703_s14, %s21_s14   ;;  %s668_s13 = sphi %s701_s13, %s875_s13   ;;  %s664_s12 = sphi %s699_s12, %s874_s12   ;;  %s660_s11 = sphi %s697_s11, %s873_s11   ;;  %s656_s10 = sphi %s695_s10, %s872_s10   ;;  %s652_s9 = sphi %s693_s9, %s871_s9  }
   0x9   : > { %s33_s17 = sadd.s32 1, %s668_s13  ;;  %s42_s18 = sadd.s32 1, %s660_s11 }
   0xa   : > { %p35_p0 = scmp.ge.s32.totalorder %s33_s17, 2  ;;  %p49_p1 = scmp.ne.s32.totalorder %s660_s11, %s656_s10 }
   0xb   : > { %p50_p2 = scmp.eq.s32.totalorder %s672_s14, 0  ;;  %p55_p3 = scmp.ne.s32.totalorder %s656_s10, %s652_s9 }
   0xc   : > { %s877_s17 = smov (%p35_p0, %s33_s17), 0  ;;  %p56_p5 = scmp.eq.s32.totalorder %s438_s15, 0 }
   0xd   : > { %p734_p4 = por %p50_p2, %p49_p1  ;;  %s37_s20 = ssub.s32 %s668_s13, %s877_s17 }
   0xe   : > { %p109_p6 = scmp.eq.s32.totalorder %s438_s15, 1  ;;  %p40_p7 = scmp.eq.s32.totalorder %s37_s20, 0 }
   0xf   : > { %p740_p8 = por %p56_p5, %p55_p3  ;;  %p115_p10 = scmp.eq.s32.totalorder %s439_s16, 1 }
  0x10   : > { %p744_p9 = por %p109_p6, %p49_p1  ;;  %p477_p13 = scmp.lt.s32.totalorder %s672_s14, 2 }
  0x11   : > { %s749_s23 = scalar_select %p40_p7, %s660_s11, %s42_s18  }
  0x12   : > { %p751_p11 = por %p115_p10, %p55_p3  ;;  %s758_s25 = sand.u32 1, %s660_s11  }
  0x13   : > { %s442_s26 = sshll.u32 %s758_s25, 3  ;;  %s457_s27 = sshll.u32 %s668_s13, 7 }
  0x14   : > { %s147_s30 = scalar_lea.hbm %s861_s0, %s457_s27  ;;  %s139_s3 = scalar_lea.vmem [#allocation2], %s442_s26 }
  0x15   : > { %s149_s4 = sshll.u32 %s139_s3, 4  ;;  %p767_p0 = pnand %p477_p13, %p734_p4  ;;  %s150_s4 = int_to_ptr.vmem [resolvable:$true] %s149_s4 }
  0x16   : > { %p448_p1 = scmp.ge.s32.totalorder %s672_s14, 1  ;;  %p175_p2 = scmp.lt.s32.totalorder %s672_s14, 3 }
  0x17   : > { %s136_s6 = scalar_lea.sflag [#allocation3], %s758_s25  ;;  %p534_p3 = pneg %p767_p0 }
  0x18   : > { %s545_s7 = scalar_lea.vmem %s150_s4, 128  ;;  %s674_s8 = smov [#allocation2]  }
  0x19   : > { %p546_p5 = scmp.ne.s32.totalorder %s150_s4, %s545_s7  ;;  %s550_s15 = sshll.u32 %s674_s8, 4  ;;  %s551_s15 = int_to_ptr.vmem [resolvable:$false] %s550_s15 }
  0x1a   : > { %s552_s16 = scalar_lea.vmem %s551_s15, 256  ;;  %p553_p4 = scmp.lt.s32.totalorder %s150_s4, %s551_s15 }
  0x1b   : > { %p548_p6 = pnand %p546_p5, %p534_p3  ;;  %p554_p10 = scmp.lt.s32.totalorder %s552_s16, %s545_s7 }
  0x1d   : > { %p549_p7 = pneg %p548_p6  ;;  %p555_p13 = por %p554_p10, %p553_p4 }
  0x1f   : > { %p556_p12 = pnand %p555_p13, %p549_p7 }
  0x21   : > { %559 = shalt.err (!%p556_p12)
}
  0x22   : > { %469 = dma.hbm_to_vmem [thread:$0]  (!%p767_p0), %s147_s30, 128, %s150_s4, %s136_s6  }
  0x23   : > { %p785_p5 = pnand %p448_p1, %p175_p2  ;;  %s168_s28 = scalar_lea.hbm %s862_s1, %s457_s27 }
  0x24   : > { %s160_s29 = scalar_lea.vmem [#allocation5], %s442_s26  ;;  %s157_s7 = scalar_lea.sflag [#allocation6], %s758_s25 }
  0x25   : > { %s170_s3 = sshll.u32 %s160_s29, 4  ;;  %s675_s30 = smov [#allocation5]   ;;  %s171_s3 = int_to_ptr.vmem [resolvable:$true] %s170_s3 }
  0x26   : > { %s573_s8 = scalar_lea.vmem %s171_s3, 128  ;;  %s578_s4 = sshll.u32 %s675_s30, 4  ;;  %s579_s4 = int_to_ptr.vmem [resolvable:$false] %s578_s4 }
  0x27   : > { %p574_p12 = scmp.ne.s32.totalorder %s171_s3, %s573_s8  ;;  %s580_s6 = scalar_lea.vmem %s579_s4, 256 }
  0x28   : > { %p581_p1 = scmp.lt.s32.totalorder %s171_s3, %s579_s4  ;;  %p582_p2 = scmp.lt.s32.totalorder %s580_s6, %s573_s8 }
  0x29   : > { %p576_p6 = pnand %p574_p12, %p534_p3 }
  0x2a   : > { %p583_p4 = por %p582_p2, %p581_p1 }
  0x2b   : > { %p577_p7 = pneg %p576_p6 }
  0x2d   : > { %p584_p10 = pnand %p583_p4, %p577_p7 }
  0x2f   : > { %587 = shalt.err (!%p584_p10)
}
  0x30   : > { %472 = dma.hbm_to_vmem [thread:$0]  (!%p767_p0), %s168_s28, 128, %s171_s3, %s157_s7  }
  0x31   : > { %179 = sbr.rel (%p785_p5) target bundleno = 114 (0x72), region = 28  ;;  %s801_s25 = sand.u32 (!%p785_p5), 1, %s656_s10  }
  0x32   : > { %s449_s26 = sshll.u32 (!%p785_p5), %s801_s25, 3  ;;  %s182_s27 = scalar_lea.sflag (!%p785_p5), [#allocation3], %s801_s25 }
  0x33   : > { %s185_s15 = scalar_lea.vmem (!%p785_p5), [#allocation2], %s449_s26 }
  0x36   : > { %639 = dma.done.wait (%p740_p8), %s182_s27, 128  }
  0x37   : > { %641 = vsyncadd (%p740_p8), %s182_s27, 4294967168  ;;  %s191_s5 = scalar_lea.sflag [#allocation6], %s801_s25  ;;  %s194_s16 = scalar_lea.vmem [#allocation5], %s449_s26 }
  0x38   : > { %643 = dma.done.wait (%p740_p8), %s191_s5, 128  }
  0x39   : > { %645 = vsyncadd (%p740_p8), %s191_s5, 4294967168  ;;  %v223_v0 = vld [vmem:[%s185_s15] sm:$0xff]  ;;  %v224_v1 = vld [vmem:[%s194_s16] sm:$0xff]  ;;  %vm229_vm0 = vcmask 1043456   ;;  %v676_v52 = vmov 1966171168   ;;  %v294_v54 = vlaneseq }
  0x3a   : > { %v244_v2 = vmul.f32 %v223_v0, %v223_v0  ;;  %v262_v3 = vmul.f32 %v224_v1, %v224_v1  ;;  %v225_v6 = vmul.f32 %v224_v1, %v223_v0  ;;  %v292_v53 = vunpack.c.l.s4 %v676_v52  ;;  %s451_s21 = sshll.u32 %s801_s25, 1  ;;  %s459_s20 = sshll.u32 %s664_s12, 5 }
  0x3b   : > { %v295_v59 = vshrl.u32 %v294_v54, 7  ;;  %s219_s18 = scalar_lea.vmem [#allocation7], %s451_s21  ;;  %vm308_vm1 = vcmp.lt.s32.totalorder %v294_v54, 256  ;;  %s326_s3 = scalar_lea.hbm %s863_s2, %s459_s20 }
  0x3c   : > { %v246_v4 = vcombine.high %v244_v2, %v244_v2  ;;  %v248_v5 = vsel %vm229_vm0, %v244_v2, 0.0  ;;  %v264_v8 = vcombine.high %v262_v3, %v262_v3  ;;  %v266_v9 = vsel %vm229_vm0, %v262_v3, 0.0  ;;  %s328_s19 = sshll.u32 %s219_s18, 4  ;;  %s312_s7 = scalar_lea.sflag [#allocation4], %s801_s25  ;;  %s329_s19 = int_to_ptr.vmem [resolvable:$true] %s328_s19 }
  0x3d   : > { %v249_v7 = vrot.slane %v248_v5, 4  ;;  %v267_v11 = vrot.slane %v266_v9, 4  ;;  %v227_v16 = vcombine.high %v225_v6, %v225_v6  ;;  %v230_v21 = vsel %vm229_vm0, %v225_v6, 0.0  ;;  %s588_s8 = scalar_lea.vmem %s329_s19, 32  ;;  %s677_s30 = smov [#allocation7]  }
  0x3e   : > { %v255_v10 = vsel %vm229_vm0, %v246_v4, 0.0  ;;  %v273_v15 = vsel %vm229_vm0, %v264_v8, 0.0  ;;  %v231_v29 = vrot.slane %v230_v21, 4  ;;  %v293_v58 = vunpack.c.0.s8 %v292_v53  ;;  %p589_p8 = scmp.ne.s32.totalorder %s329_s19, %s588_s8  ;;  %s592_s4 = sshll.u32 %s677_s30, 4  ;;  %s593_s4 = int_to_ptr.vmem [resolvable:$false] %s592_s4 }
  0x3f   : > { %v250_v12 = vadd.f32 %v249_v7, %v248_v5  ;;  %v256_v13 = vrot.slane %v255_v10, 4  ;;  %v268_v14 = vadd.f32 %v267_v11, %v266_v9  ;;  %v274_v20 = vrot.slane %v273_v15, 4  ;;  %s594_s6 = scalar_lea.vmem %s593_s4, 64  ;;  %p595_p13 = scmp.lt.s32.totalorder %s329_s19, %s593_s4 }
  0x40   : > { %v237_v26 = vsel %vm229_vm0, %v227_v16, 0.0  ;;  %v232_v37 = vadd.f32 %v231_v29, %v230_v21  ;;  %v296_v63 = vsub.s32 %v293_v58, %v295_v59  ;;  %p590_p0 = pnand %p589_p8, %p744_p9  ;;  %p596_p5 = scmp.lt.s32.totalorder %s594_s6, %s588_s8 }
  0x41   : > { %v251_v17 = vrot.slane %v250_v12, 2  ;;  %v257_v18 = vadd.f32 %v256_v13, %v255_v10  ;;  %v269_v19 = vrot.slane %v268_v14, 2  ;;  %v275_v25 = vadd.f32 %v274_v20, %v273_v15 }
  0x42   : > { %v238_v34 = vrot.slane %v237_v26, 4  ;;  %v233_v44 = vrot.slane %v232_v37, 2  ;;  %p591_p3 = pneg %p590_p0  ;;  %p597_p12 = por %p596_p5, %p595_p13 }
  0x43   : > { %v252_v22 = vadd.f32 %v251_v17, %v250_v12  ;;  %v258_v23 = vrot.slane %v257_v18, 2  ;;  %v270_v24 = vadd.f32 %v269_v19, %v268_v14  ;;  %v276_v31 = vrot.slane %v275_v25, 2 }
  0x44   : > { %v239_v41 = vadd.f32 %v238_v34, %v237_v26  ;;  %v234_v48 = vadd.f32 %v233_v44, %v232_v37  ;;  %p598_p6 = pnand %p597_p12, %p591_p3 }
  0x45   : > { %v253_v27 = vrot.slane %v252_v22, 1  ;;  %v259_v28 = vadd.f32 %v258_v23, %v257_v18  ;;  %v271_v30 = vrot.slane %v270_v24, 1  ;;  %v277_v36 = vadd.f32 %v276_v31, %v275_v25 }
  0x46   : > { %v240_v46 = vrot.slane %v239_v41, 2  ;;  %v235_v50 = vrot.slane %v234_v48, 1 }
  0x47   : > { %v254_v32 = vadd.f32 %v253_v27, %v252_v22  ;;  %v260_v33 = vrot.slane %v259_v28, 1  ;;  %v272_v35 = vadd.f32 %v271_v30, %v270_v24  ;;  %v278_v39 = vrot.slane %v277_v36, 1 }
  0x48   : > { %v241_v49 = vadd.f32 %v240_v46, %v239_v41  ;;  %v236_v55 = vadd.f32 %v235_v50, %v234_v48 }
  0x49   : > { %v261_v38 = vadd.f32 %v260_v33, %v259_v28  ;;  %v280_v40 = vmul.f32 %v272_v35, %v254_v32  ;;  %v279_v42 = vadd.f32 %v278_v39, %v277_v36 }
  0x4a   : > { %v242_v51 = vrot.slane %v241_v49, 1 }
  0x4b   : > { %v282_v43 = vmax.f32 %v280_v40, 1e-16  ;;  %v281_v45 = vmul.f32 %v279_v42, %v261_v38 }
  0x4c   : > { %v243_v57 = vadd.f32 %v242_v51, %v241_v49 }
  0x4d   : > { %528 = vrsqrt.f32 %v282_v43  ;;  %v283_v47 = vmax.f32 %v281_v45, 1e-16 }
  0x4f   : > { %530 = vrsqrt.f32 %v283_v47 }
  0x5a   : > { %v529_v56 = vpop.eup %528 }
  0x5b   : > { %v286_v60 = vmul.f32 %v529_v56, %v236_v55 }
  0x5c   : > { %v531_v61 = vpop.eup %530 }
  0x5d   : > { %v287_v62 = vmul.f32 %v531_v61, %v243_v57 }
  0x5f   : > { %v290_v0 = vcombine.low %v286_v60, %v287_v62 }
  0x61   : > { %v297_v1 = vrot.slane %v290_v0, %v296_v63 }
  0x63   : > { %v304_v2 = vrot.slane %v297_v1, %v296_v63 }
  0x65   : > { %310 = vst.msk [vmem:[%s219_s18] sm:$0x3] %vm308_vm1, %v304_v2 }
  0x66   : > { %601 = shalt.err (!%p598_p6)
}
  0x67   : > { %s602_s12 = scalar_lea.hbm %s326_s3, 32  ;;  %s606_s27 = scalar_lea.hbm %s863_s2, 64 }
  0x68   : > { %p603_p7 = scmp.ne.s32.totalorder %s326_s3, %s602_s12  ;;  %p607_p4 = scmp.lt.s32.totalorder %s326_s3, %s863_s2 }
  0x69   : > { %p608_p10 = scmp.lt.s32.totalorder %s606_s27, %s602_s12 }
  0x6a   : > { %p604_p1 = pnand %p603_p7, %p744_p9 }
  0x6b   : > { %p609_p8 = por %p608_p10, %p607_p4 }
  0x6c   : > { %p605_p2 = pneg %p604_p1 }
  0x6e   : > { %p610_p0 = pnand %p609_p8, %p605_p2 }
  0x70   : > { %613 = shalt.err (!%p610_p0)
}
  0x71   : > { %464 = dma.vmem_to_hbm [thread:$0]  (%p744_p9), %s329_s19, 32, %s326_s3, %s312_s7  }
  0x72 PF: > { %s340_s16 = sand.u32 1, %s652_s9   ;;  %p870_p3 = scmp.ge.s32.totalorder %s672_s14, 2 }
  0x73   : > { %s341_s21 = scalar_lea.sflag [#allocation4], %s340_s16 }
  0x74   : > { %p474_p13 = pnand %p870_p3, %p751_p11 }
  0x76   : > { %p475_p5 = pneg %p474_p13 }
  0x78   : > { %647 = dma.done.wait (%p475_p5), %s341_s21, 32  }
  0x79   : > { %649 = vsyncadd (%p475_p5), %s341_s21, 4294967264  ;;  %s21_s14 = sadd.s32 1, %s672_s14   ;;  %s871_s9 = smov %s656_s10 }
  0x7a   : > { %p18_p12 = scmp.ge.s32.totalorder %s21_s14, 4   ;;  %s872_s10 = smov %s660_s11 }
  0x7b   : > { %s873_s11 = smov %s749_s23  ;;  %s874_s12 = smov %s668_s13 }
  0x7c   : > { %s875_s13 = smov %s877_s17  ;;  %20 = sbr.rel (!%p18_p12) target bundleno = 8 (0x8), region = 86 }
  0x81   :  { %346 = vsyncpa [#allocation3], 1 }
  0x82   :  { %348 = vsyncpa [#allocation3 + $0x1], 1 }
  0x83   :  { %349 = vsyncpa [#allocation6], 1 }
  0x84   :  { %351 = vsyncpa [#allocation6 + $0x1], 1 }
  0x85   :  { %352 = vsyncpa [#allocation4], 1 }
  0x86   :  { %354 = vsyncpa [#allocation4 + $0x1], 1 }

</bundles_post_ra>
